<compile_context>
chip_gen: v5e
topology: v5e:2x2
jax: 0.10.0
libtpu: 0.0.40
codegen_flags: <defaults>
</compile_context>

<pallas_src>
import functools

import jax
import jax.numpy as jnp
import numpy as np
from jax import lax
from jax.experimental import pallas as pl
from jax.experimental.pallas import tpu as pltpu

_LANES = 128
# Sentinel labels for padded rows/columns: they never equal each other or any
# realistic user label, so padded rows get mask_sum == 0 (dropped) and padded
# columns never create spurious positives, with zero hot-path cost.
_ROW_SENTINEL = int(np.iinfo(np.int32).min)        # padded anchor rows
_COL_SENTINEL = int(np.iinfo(np.int32).min) + 1    # padded contrast columns


def _round_up(x, m):
    return (x + m - 1) // m * m


def _ceil_div(a, b):
    return -(-a // b)


def _supcon_kernel(row_lab_ref, col_lab_ref, a_ref, c_ref,
                   sum_ref, cnt_ref,
                   m_run, d_run, ms_run, msum_run,
                   *, inv_temp, loss_scale, n_valid, tm, tn, has_col_pad):
    i = pl.program_id(0)
    j = pl.program_id(1)
    n_groups = tn // _LANES

    # ---- init lane-wise running state at the first contrast block ----------
    @pl.when(j == 0)
    def _():
        m_run[...] = jnp.full_like(m_run, -jnp.inf)
        d_run[...] = jnp.zeros_like(d_run)
        ms_run[...] = jnp.zeros_like(ms_run)
        msum_run[...] = jnp.zeros_like(msum_run)

    # ---- scaled logits tile [tm, tn]: bf16 MXU matmul, f32 accumulation ----
    s = lax.dot_general(a_ref[...], c_ref[...], (((1,), (1,)), ((), ())),
                        preferred_element_type=jnp.float32) * inv_temp

    row_lab = row_lab_ref[...]                    # (tm, 1) int32
    col_lab = col_lab_ref[...]                    # (1, tn) int32

    # ---- lane-wise (tm, 128) flash-style update (hot path, no masks) -------
    # NB: the running max deliberately includes the self-similarity diagonal
    # and the zero logits of padded columns (torch also maxes over unmasked
    # logits; the LSE below is shift-invariant) — do not "fix" this.
    sg_list = [s[:, g * _LANES:(g + 1) * _LANES] for g in range(n_groups)]
    tile_max = sg_list[0]
    for g in range(1, n_groups):
        tile_max = jnp.maximum(tile_max, sg_list[g])

    m_prev = m_run[...]
    m_new = jnp.maximum(m_prev, tile_max)
    d_acc = d_run[...] * jnp.exp(m_prev - m_new)
    ms_acc = ms_run[...]
    msum_acc = msum_run[...]
    for g in range(n_groups):
        sg = sg_list[g]
        cg = col_lab[:, g * _LANES:(g + 1) * _LANES]          # (1, 128)
        posf = jnp.where(row_lab == cg, 1.0, 0.0)             # (tm, 128) f32
        d_acc = d_acc + jnp.exp(sg - m_new)
        ms_acc = ms_acc + posf * sg
        msum_acc = msum_acc + posf
    m_run[...] = m_new
    d_run[...] = d_acc
    ms_run[...] = ms_acc
    msum_run[...] = msum_acc

    # ---- rare-tile corrections (kept out of the interior-tile hot path) ----
    # (a) self-contrast (diagonal) exclusion: only tiles that straddle the
    #     diagonal pay for the 2-D compare / selects.  The subtraction uses
    #     the same sg / m_new values that were just accumulated, so it cancels
    #     exactly.
    @pl.when(jnp.logical_and(i * tm < (j + 1) * tn, j * tn < (i + 1) * tm))
    def _():
        row_ids = lax.broadcasted_iota(jnp.int32, (tm, 1), 0) + i * tm
        d = d_run[...]
        ms = ms_run[...]
        msum = msum_run[...]
        for g in range(n_groups):
            col_ids = (lax.broadcasted_iota(jnp.int32, (1, _LANES), 1)
                       + (j * tn + g * _LANES))
            on_diag = row_ids == col_ids                       # (tm, 128)
            sg = sg_list[g]
            cg = col_lab[:, g * _LANES:(g + 1) * _LANES]
            hit = jnp.logical_and(on_diag, row_lab == cg)
            d = d - jnp.where(on_diag, jnp.exp(sg - m_new), 0.0)
            ms = ms - jnp.where(hit, sg, 0.0)
            msum = msum - jnp.where(hit, 1.0, 0.0)
        d_run[...] = d
        ms_run[...] = ms
        msum_run[...] = msum

    # (b) padded contrast columns: remove their exp(0) contribution to the
    #     denominator (their sentinel labels already keep them out of ms/msum).
    if has_col_pad:
        @pl.when((j + 1) * tn > n_valid)
        def _():
            d = d_run[...]
            for g in range(n_groups):
                col_ids = (lax.broadcasted_iota(jnp.int32, (1, _LANES), 1)
                           + (j * tn + g * _LANES))
                is_pad = col_ids >= n_valid                    # (1, 128)
                d = d - jnp.where(is_pad, jnp.exp(sg_list[g] - m_new), 0.0)
            d_run[...] = d

    # ---- finalize: fold 128 lanes -> per-row stats, emit block partials ----
    # Cross-lane XLU reductions happen only here (once per anchor block).
    @pl.when(j == pl.num_programs(1) - 1)
    def _():
        m_lane = m_run[...]                                    # (tm, 128)
        m_row = jnp.max(m_lane, axis=1, keepdims=True)         # (tm, 1)
        d_row = jnp.sum(d_run[...] * jnp.exp(m_lane - m_row), axis=1,
                        keepdims=True)
        ms = jnp.sum(ms_run[...], axis=1, keepdims=True)
        msum = jnp.sum(msum_run[...], axis=1, keepdims=True)
        log_denom = m_row + jnp.log(d_row)                     # LSE over valid cols
        valid = msum > 0.5                                     # torch select_mask
        mean_lpp = (ms - msum * log_denom) / jnp.where(valid, msum, 1.0)
        valid = jnp.logical_and(valid, mean_lpp == mean_lpp)   # torch x[x == x] NaN filter
        per_row = jnp.where(valid, -loss_scale * mean_lpp, 0.0)
        sum_ref[...] = jnp.full((1, 8, 128), jnp.sum(per_row), jnp.float32)
        cnt_ref[...] = jnp.full((1, 8, 128),
                                jnp.sum(valid.astype(jnp.float32)), jnp.float32)


def _choose_tiles(A, N, d_pad, block_m, block_n, vmem_budget):
    """Pick (tm, n_ai, tn, n_nj) with minimal padding, n_ai >= 2 when possible
    (v7x megacore), shrinking blocks until the estimated VMEM footprint fits."""
    block_m = max(16, _round_up(block_m, 16))
    block_n = max(_LANES, _round_up(block_n, _LANES))
    while True:
        a16 = _round_up(A, 16)
        n128 = _round_up(N, _LANES)
        n_ai = max(2, _ceil_div(a16, block_m)) if a16 >= 32 else 1
        tm = _round_up(_ceil_div(a16, n_ai), 16)
        n_nj = max(1, _ceil_div(n128, block_n))
        tn = _round_up(_ceil_div(n128, n_nj), _LANES)
        est = (2 * (tm + tn) * d_pad * 2          # double-buffered bf16 tiles
               + 4 * tm * _LANES * 4              # lane-wise running stats
               + 4 * tm * tn * 4                  # s / exp / posf temporaries
               + (1 << 20))                       # slack
        if est <= vmem_budget or (block_n == _LANES and block_m == 16):
            return tm, n_ai, tn, n_nj, est
        if block_n > _LANES:
            block_n = max(_LANES, block_n // 2)
        else:
            block_m = max(16, block_m // 2)


def _pad2d(x, rows, cols, dtype):
    r, c = x.shape
    x = x.astype(dtype)
    if (r, c) == (rows, cols):
        return x                                   # no extra HBM copy when aligned
    return jnp.zeros((rows, cols), dtype).at[:r, :c].set(x)


def supcon_loss(features, labels=None, mask=None, *, temperature=0.07,
                contrast_mode='all', base_temperature=0.07,
                block_m=512, block_n=512, matmul_dtype=jnp.bfloat16,
                vmem_budget_bytes=52 * 1024 * 1024):
    features = jnp.asarray(features)
    if features.ndim < 3:
        raise ValueError('`features` needs to be [bsz, n_views, ...]')
    if features.ndim > 3:
        features = features.reshape(features.shape[0], features.shape[1], -1)
    bsz, n_views, dim = features.shape

    if labels is not None and mask is not None:
        raise ValueError('Cannot define both `labels` and `mask`')
    if mask is not None:
        # TODO(synk): arbitrary/asymmetric [bsz, bsz] `mask` inputs are not ported to
        # the in-kernel label-equality mask; only `labels` / default SimCLR supported.
        raise NotImplementedError('explicit `mask` is not supported by the Pallas kernel')
    if labels is None:
        labels = jnp.arange(bsz, dtype=jnp.int32)  # eye(bsz) base mask
    labels = jnp.asarray(labels).reshape(-1).astype(jnp.int32)
    if labels.shape[0] != bsz:
        raise ValueError('Num of labels does not match num of features')

    # view-major concatenation == torch.cat(torch.unbind(features, dim=1), dim=0)
    contrast_feature = jnp.transpose(features, (1, 0, 2)).reshape(n_views * bsz, dim)
    if contrast_mode == 'one':
        anchor_feature = features[:, 0, :]
        anchor_count = 1
    elif contrast_mode == 'all':
        anchor_feature = contrast_feature
        anchor_count = n_views
    else:
        raise ValueError('Unknown mode: {}'.format(contrast_mode))

    A = bsz * anchor_count
    N = bsz * n_views
    row_labels = jnp.tile(labels, anchor_count)
    col_labels = jnp.tile(labels, n_views)

    d_pad = _round_up(dim, _LANES)
    tm, n_ai, tn, n_nj, vmem_est = _choose_tiles(A, N, d_pad, block_m, block_n,
                                                 vmem_budget_bytes)
    a_pad = n_ai * tm
    n_pad = n_nj * tn

    a = _pad2d(anchor_feature, a_pad, d_pad, matmul_dtype)
    c = _pad2d(contrast_feature, n_pad, d_pad, matmul_dtype)
    if a_pad == A:
        rl = row_labels.reshape(a_pad, 1)
    else:
        rl = jnp.full((a_pad, 1), _ROW_SENTINEL, jnp.int32).at[:A, 0].set(row_labels)
    if n_pad == N:
        cl = col_labels.reshape(1, n_pad)
    else:
        cl = jnp.full((1, n_pad), _COL_SENTINEL, jnp.int32).at[0, :N].set(col_labels)

    kernel = functools.partial(
        _supcon_kernel,
        inv_temp=float(1.0 / temperature),
        loss_scale=float(temperature / base_temperature),
        n_valid=N, tm=tm, tn=tn, has_col_pad=(n_pad != N))

    bytes_accessed = ((a_pad * d_pad + n_ai * n_pad * d_pad) * 2   # bf16 tiles
                      + (a_pad + n_pad) * 4                        # labels
                      + n_ai * 2 * 8 * 128 * 4)                    # partials
    cost = pl.CostEstimate(flops=2 * a_pad * n_pad * d_pad,
                           transcendentals=a_pad * n_pad,
                           bytes_accessed=int(bytes_accessed))

    vmem_limit = int(min(max(2 * vmem_est, 32 * 1024 * 1024),
                         vmem_budget_bytes + 8 * 1024 * 1024))     # v7x-safe (< 64 MiB)

    sums, counts = pl.pallas_call(
        kernel,
        out_shape=(jax.ShapeDtypeStruct((n_ai, 8, 128), jnp.float32),
                   jax.ShapeDtypeStruct((n_ai, 8, 128), jnp.float32)),
        grid_spec=pltpu.PrefetchScalarGridSpec(
            num_scalar_prefetch=0,
            grid=(n_ai, n_nj),
            in_specs=[
                pl.BlockSpec((tm, 1), lambda i, j: (i, 0)),        # row labels
                pl.BlockSpec((1, tn), lambda i, j: (0, j)),        # col labels
                pl.BlockSpec((tm, d_pad), lambda i, j: (i, 0)),    # anchor tile (bf16)
                pl.BlockSpec((tn, d_pad), lambda i, j: (j, 0)),    # contrast tile (bf16)
            ],
            out_specs=[
                pl.BlockSpec((1, 8, 128), lambda i, j: (i, 0, 0)),
                pl.BlockSpec((1, 8, 128), lambda i, j: (i, 0, 0)),
            ],
            scratch_shapes=[pltpu.VMEM((tm, _LANES), jnp.float32)] * 4,
        ),
        compiler_params=pltpu.CompilerParams(
            dimension_semantics=("parallel", "arbitrary"),
            vmem_limit_bytes=vmem_limit,
        ),
        cost_estimate=cost,
    )(rl, cl, a, c)

    total = jnp.sum(sums[:, 0, 0])
    count = jnp.sum(counts[:, 0, 0])
    # If no anchor row has any positive this is 0/0 -> NaN, matching torch's
    # mean of an empty (NaN-filtered) tensor.
    return total / count


def _supcon_loss_ref(features, labels=None, *, temperature=0.07,
                     base_temperature=0.07, contrast_mode='all',
                     matmul_dtype=jnp.float32):
    # pure-JAX reference mirroring the torch code
    features = features.astype(jnp.float32)
    bsz, n_views, dim = features.shape
    if labels is None:
        base_mask = jnp.eye(bsz, dtype=jnp.float32)
    else:
        labels = labels.reshape(-1, 1)
        base_mask = (labels == labels.T).astype(jnp.float32)
    cf = jnp.transpose(features, (1, 0, 2)).reshape(n_views * bsz, dim)
    if contrast_mode == 'one':
        af, anchor_count = features[:, 0, :], 1
    else:
        af, anchor_count = cf, n_views
    adc = jnp.dot(af.astype(matmul_dtype), cf.astype(matmul_dtype).T,
                  preferred_element_type=jnp.float32) / temperature
    logits = adc - jnp.max(adc, axis=1, keepdims=True)
    A, N = bsz * anchor_count, bsz * n_views
    logits_mask = jnp.ones((A, N), jnp.float32) - jnp.eye(A, N, dtype=jnp.float32)
    m = jnp.tile(base_mask, (anchor_count, n_views)) * logits_mask
    exp_logits = jnp.exp(logits) * logits_mask
    log_prob = logits - jnp.log(exp_logits.sum(1, keepdims=True))
    msum = m.sum(1)
    valid = msum != 0
    mean_lpp = (m * log_prob).sum(1) / jnp.where(valid, msum, 1.0)
    valid = jnp.logical_and(valid, mean_lpp == mean_lpp)
    per_row = -(temperature / base_temperature) * mean_lpp
    return jnp.sum(jnp.where(valid, per_row, 0.0)) / jnp.sum(valid.astype(jnp.float32))


if __name__ == "__main__":
    key = jax.random.PRNGKey(0)

    # --- small, deliberately (8,128)-unaligned shapes ------------------------
    bsz, n_views, dim = 10, 2, 96
    feats = jax.random.normal(key, (bsz, n_views, dim), dtype=jnp.float32)
    feats = feats / jnp.linalg.norm(feats, axis=-1, keepdims=True)
    labels = jnp.array([0, 0, 1, 1, 2, 2, 3, 3, 4, 4], dtype=jnp.int32)

    # supervised, contrast_mode='all'
    loss_sup = jax.block_until_ready(supcon_loss(feats, labels=labels))
    np.testing.assert_allclose(
        np.asarray(loss_sup),
        np.asarray(_supcon_loss_ref(feats, labels, matmul_dtype=jnp.bfloat16)),
        rtol=2e-3, atol=2e-3)
    np.testing.assert_allclose(
        np.asarray(loss_sup), np.asarray(_supcon_loss_ref(feats, labels)),
        rtol=5e-2, atol=5e-2)

    # unsupervised SimCLR case (labels=None -> eye mask)
    loss_simclr = jax.block_until_ready(supcon_loss(feats))
    np.testing.assert_allclose(
        np.asarray(loss_simclr), np.asarray(_supcon_loss_ref(feats, None)),
        rtol=5e-2, atol=5e-2)

    # contrast_mode='one'
    loss_one = jax.block_until_ready(supcon_loss(feats, labels=labels,
                                                 contrast_mode='one'))
    np.testing.assert_allclose(
        np.asarray(loss_one),
        np.asarray(_supcon_loss_ref(feats, labels, contrast_mode='one',
                                    matmul_dtype=jnp.bfloat16)),
        rtol=2e-3, atol=2e-3)

    # --- larger case exercising interior tiles, diagonal-straddling tiles and
    #     the padded-column correction in the same launch ----------------------
    bsz2, n_views2, dim2 = 300, 2, 96
    key2 = jax.random.PRNGKey(0)
    feats2 = jax.random.normal(key2, (bsz2, n_views2, dim2), dtype=jnp.float32)
    feats2 = feats2 / jnp.linalg.norm(feats2, axis=-1, keepdims=True)
    labels2 = (jnp.arange(bsz2, dtype=jnp.int32) % 50)
    loss_big = jax.block_until_ready(supcon_loss(feats2, labels=labels2))
    np.testing.assert_allclose(
        np.asarray(loss_big),
        np.asarray(_supcon_loss_ref(feats2, labels2, matmul_dtype=jnp.bfloat16)),
        rtol=5e-3, atol=5e-3)
    np.testing.assert_allclose(
        np.asarray(loss_big), np.asarray(_supcon_loss_ref(feats2, labels2)),
        rtol=5e-2, atol=5e-2)

    print("KERNEL_OK")
</pallas_src>

<mosaic_0001>
module attributes {stable_mosaic.version = 11 : i64} {
  func.func @_supcon_kernel(%arg0: i32, %arg1: i32, %arg2: memref<16x1xi32, #tpu.memory_space<vmem>>, %arg3: memref<1x128xi32, #tpu.memory_space<vmem>>, %arg4: memref<16x128xbf16, #tpu.memory_space<vmem>>, %arg5: memref<128x128xbf16, #tpu.memory_space<vmem>>, %arg6: memref<1x8x128xf32, #tpu.memory_space<vmem>>, %arg7: memref<1x8x128xf32, #tpu.memory_space<vmem>>, %arg8: memref<16x128xf32, #tpu.memory_space<vmem>>, %arg9: memref<16x128xf32, #tpu.memory_space<vmem>>, %arg10: memref<16x128xf32, #tpu.memory_space<vmem>>, %arg11: memref<16x128xf32, #tpu.memory_space<vmem>>) attributes {dimension_semantics = [#tpu.dimension_semantics<parallel>, #tpu.dimension_semantics<arbitrary>], iteration_bounds = array<i64: 2, 1>, scalar_prefetch = 0 : i64, scratch_operands = 4 : i64, tpu.core_type = #tpu.core_type<tc>, window_params = [{transform_indices = @transform_0, window_bounds = array<i64: 16, 1>}, {transform_indices = @transform_1, window_bounds = array<i64: 1, 128>}, {transform_indices = @transform_2, window_bounds = array<i64: 16, 128>}, {transform_indices = @transform_3, window_bounds = array<i64: 128, 128>}, {transform_indices = @transform_4, window_bounds = array<i64: 1, 8, 128>}, {transform_indices = @transform_5, window_bounds = array<i64: 1, 8, 128>}]} {
    %c0_i32 = arith.constant 0 : i32
    %0 = arith.cmpi eq, %arg1, %c0_i32 : i32
    %1 = arith.extui %0 : i1 to i32
    %c0_i32_0 = arith.constant 0 : i32
    %2 = arith.cmpi ne, %1, %c0_i32_0 : i32
    scf.if %2 {
      %cst_36 = arith.constant 0xFF800000 : f32
      %53 = vector.broadcast %cst_36 : f32 to vector<16x128xf32>
      %c0_37 = arith.constant 0 : index
      %c0_38 = arith.constant 0 : index
      %54 = vector.load %arg8[%c0_37, %c0_38] : memref<16x128xf32, #tpu.memory_space<vmem>>, vector<16x128xf32>
      tpu.vector_store %arg8[%c0_37, %c0_38], %53 {strides = array<i32>} : memref<16x128xf32, #tpu.memory_space<vmem>>, vector<16x128xf32>,
      %cst_39 = arith.constant 0.000000e+00 : f32
      %55 = vector.broadcast %cst_39 : f32 to vector<16x128xf32>
      %c0_40 = arith.constant 0 : index
      %c0_41 = arith.constant 0 : index
      %56 = vector.load %arg9[%c0_40, %c0_41] : memref<16x128xf32, #tpu.memory_space<vmem>>, vector<16x128xf32>
      tpu.vector_store %arg9[%c0_40, %c0_41], %55 {strides = array<i32>} : memref<16x128xf32, #tpu.memory_space<vmem>>, vector<16x128xf32>,
      %cst_42 = arith.constant 0.000000e+00 : f32
      %57 = vector.broadcast %cst_42 : f32 to vector<16x128xf32>
      %c0_43 = arith.constant 0 : index
      %c0_44 = arith.constant 0 : index
      %58 = vector.load %arg10[%c0_43, %c0_44] : memref<16x128xf32, #tpu.memory_space<vmem>>, vector<16x128xf32>
      tpu.vector_store %arg10[%c0_43, %c0_44], %57 {strides = array<i32>} : memref<16x128xf32, #tpu.memory_space<vmem>>, vector<16x128xf32>,
      %cst_45 = arith.constant 0.000000e+00 : f32
      %59 = vector.broadcast %cst_45 : f32 to vector<16x128xf32>
      %c0_46 = arith.constant 0 : index
      %c0_47 = arith.constant 0 : index
      %60 = vector.load %arg11[%c0_46, %c0_47] : memref<16x128xf32, #tpu.memory_space<vmem>>, vector<16x128xf32>
      tpu.vector_store %arg11[%c0_46, %c0_47], %59 {strides = array<i32>} : memref<16x128xf32, #tpu.memory_space<vmem>>, vector<16x128xf32>,
    } else {
    }
    %c0 = arith.constant 0 : index
    %c0_1 = arith.constant 0 : index
    %3 = vector.load %arg4[%c0, %c0_1] : memref<16x128xbf16, #tpu.memory_space<vmem>>, vector<16x128xbf16>
    %c0_2 = arith.constant 0 : index
    %c0_3 = arith.constant 0 : index
    %4 = vector.load %arg5[%c0_2, %c0_3] : memref<128x128xbf16, #tpu.memory_space<vmem>>, vector<128x128xbf16>
    %cst = arith.constant dense<0.000000e+00> : vector<16x128xf32>
    %5 = tpu.matmul %3, %4, %cst {dimension_numbers = #tpu.dot_dimension_numbers<[1], [1], [0], [0], [0, 0, 1, 0], [], []>} : vector<16x128xbf16>, vector<128x128xbf16>, vector<16x128xf32> -> vector<16x128xf32>
    %cst_4 = arith.constant 14.2857141 : f32
    %6 = vector.broadcast %cst_4 : f32 to vector<16x128xf32>
    %7 = arith.mulf %5, %6 : vector<16x128xf32>
    %c0_5 = arith.constant 0 : index
    %c0_6 = arith.constant 0 : index
    %8 = vector.load %arg2[%c0_5, %c0_6] : memref<16x1xi32, #tpu.memory_space<vmem>>, vector<16x1xi32>
    %c0_7 = arith.constant 0 : index
    %c0_8 = arith.constant 0 : index
    %9 = vector.load %arg3[%c0_7, %c0_8] : memref<1x128xi32, #tpu.memory_space<vmem>>, vector<1x128xi32>
    %c0_9 = arith.constant 0 : index
    %c0_10 = arith.constant 0 : index
    %10 = vector.load %arg8[%c0_9, %c0_10] : memref<16x128xf32, #tpu.memory_space<vmem>>, vector<16x128xf32>
    %11 = arith.maximumf %10, %7 : vector<16x128xf32>
    %c0_11 = arith.constant 0 : index
    %c0_12 = arith.constant 0 : index
    %12 = vector.load %arg9[%c0_11, %c0_12] : memref<16x128xf32, #tpu.memory_space<vmem>>, vector<16x128xf32>
    %13 = arith.subf %10, %11 : vector<16x128xf32>
    %14 = math.exp %13 : vector<16x128xf32>
    %15 = arith.mulf %12, %14 : vector<16x128xf32>
    %c0_13 = arith.constant 0 : index
    %c0_14 = arith.constant 0 : index
    %16 = vector.load %arg10[%c0_13, %c0_14] : memref<16x128xf32, #tpu.memory_space<vmem>>, vector<16x128xf32>
    %c0_15 = arith.constant 0 : index
    %c0_16 = arith.constant 0 : index
    %17 = vector.load %arg11[%c0_15, %c0_16] : memref<16x128xf32, #tpu.memory_space<vmem>>, vector<16x128xf32>
    %18 = vector.broadcast %8 : vector<16x1xi32> to vector<16x128xi32>
    %19 = vector.broadcast %9 : vector<1x128xi32> to vector<16x128xi32>
    %20 = arith.cmpi eq, %18, %19 : vector<16x128xi32>
    %cst_17 = arith.constant 1.000000e+00 : f32
    %cst_18 = arith.constant 0.000000e+00 : f32
    %21 = vector.broadcast %cst_17 : f32 to vector<16x128xf32>
    %22 = vector.broadcast %cst_18 : f32 to vector<16x128xf32>
    %23 = arith.select %20, %21, %22 : vector<16x128xi1>, vector<16x128xf32>
    %24 = arith.subf %7, %11 : vector<16x128xf32>
    %25 = math.exp %24 : vector<16x128xf32>
    %26 = arith.addf %15, %25 : vector<16x128xf32>
    %27 = arith.mulf %23, %7 : vector<16x128xf32>
    %28 = arith.addf %16, %27 : vector<16x128xf32>
    %29 = arith.addf %17, %23 : vector<16x128xf32>
    %c0_19 = arith.constant 0 : index
    %c0_20 = arith.constant 0 : index
    %30 = vector.load %arg8[%c0_19, %c0_20] : memref<16x128xf32, #tpu.memory_space<vmem>>, vector<16x128xf32>
    tpu.vector_store %arg8[%c0_19, %c0_20], %11 {strides = array<i32>} : memref<16x128xf32, #tpu.memory_space<vmem>>, vector<16x128xf32>,
    %c0_21 = arith.constant 0 : index
    %c0_22 = arith.constant 0 : index
    %31 = vector.load %arg9[%c0_21, %c0_22] : memref<16x128xf32, #tpu.memory_space<vmem>>, vector<16x128xf32>
    tpu.vector_store %arg9[%c0_21, %c0_22], %26 {strides = array<i32>} : memref<16x128xf32, #tpu.memory_space<vmem>>, vector<16x128xf32>,
    %c0_23 = arith.constant 0 : index
    %c0_24 = arith.constant 0 : index
    %32 = vector.load %arg10[%c0_23, %c0_24] : memref<16x128xf32, #tpu.memory_space<vmem>>, vector<16x128xf32>
    tpu.vector_store %arg10[%c0_23, %c0_24], %28 {strides = array<i32>} : memref<16x128xf32, #tpu.memory_space<vmem>>, vector<16x128xf32>,
    %c0_25 = arith.constant 0 : index
    %c0_26 = arith.constant 0 : index
    %33 = vector.load %arg11[%c0_25, %c0_26] : memref<16x128xf32, #tpu.memory_space<vmem>>, vector<16x128xf32>
    tpu.vector_store %arg11[%c0_25, %c0_26], %29 {strides = array<i32>} : memref<16x128xf32, #tpu.memory_space<vmem>>, vector<16x128xf32>,
    %c16_i32 = arith.constant 16 : i32
    %34 = arith.muli %arg0, %c16_i32 : i32
    %c1_i32 = arith.constant 1 : i32
    %35 = arith.addi %arg1, %c1_i32 : i32
    %c128_i32 = arith.constant 128 : i32
    %36 = arith.muli %35, %c128_i32 : i32
    %37 = arith.cmpi slt, %34, %36 : i32
    %c128_i32_27 = arith.constant 128 : i32
    %38 = arith.muli %arg1, %c128_i32_27 : i32
    %c1_i32_28 = arith.constant 1 : i32
    %39 = arith.addi %arg0, %c1_i32_28 : i32
    %c16_i32_29 = arith.constant 16 : i32
    %40 = arith.muli %39, %c16_i32_29 : i32
    %41 = arith.cmpi slt, %38, %40 : i32
    %42 = arith.andi %37, %41 : i1
    %43 = arith.extui %42 : i1 to i32
    %c0_i32_30 = arith.constant 0 : i32
    %44 = arith.cmpi ne, %43, %c0_i32_30 : i32
    scf.if %44 {
      %53 = tpu.iota {dimensions = array<i32: 0>} : vector<16x1xi32>
      %c16_i32_36 = arith.constant 16 : i32
      %54 = arith.muli %arg0, %c16_i32_36 : i32
      %55 = vector.broadcast %54 : i32 to vector<16x1xi32>
      %56 = arith.addi %53, %55 : vector<16x1xi32>
      %c0_37 = arith.constant 0 : index
      %c0_38 = arith.constant 0 : index
      %57 = vector.load %arg9[%c0_37, %c0_38] : memref<16x128xf32, #tpu.memory_space<vmem>>, vector<16x128xf32>
      %c0_39 = arith.constant 0 : index
      %c0_40 = arith.constant 0 : index
      %58 = vector.load %arg10[%c0_39, %c0_40] : memref<16x128xf32, #tpu.memory_space<vmem>>, vector<16x128xf32>
      %c0_41 = arith.constant 0 : index
      %c0_42 = arith.constant 0 : index
      %59 = vector.load %arg11[%c0_41, %c0_42] : memref<16x128xf32, #tpu.memory_space<vmem>>, vector<16x128xf32>
      %60 = tpu.iota {dimensions = array<i32: 1>} : vector<1x128xi32>
      %c128_i32_43 = arith.constant 128 : i32
      %61 = arith.muli %arg1, %c128_i32_43 : i32
      %c0_i32_44 = arith.constant 0 : i32
      %62 = arith.addi %61, %c0_i32_44 : i32
      %63 = vector.broadcast %62 : i32 to vector<1x128xi32>
      %64 = arith.addi %60, %63 : vector<1x128xi32>
      %65 = vector.broadcast %56 : vector<16x1xi32> to vector<16x128xi32>
      %66 = vector.broadcast %64 : vector<1x128xi32> to vector<16x128xi32>
      %67 = arith.cmpi eq, %65, %66 : vector<16x128xi32>
      %68 = vector.broadcast %8 : vector<16x1xi32> to vector<16x128xi32>
      %69 = vector.broadcast %9 : vector<1x128xi32> to vector<16x128xi32>
      %70 = arith.cmpi eq, %68, %69 : vector<16x128xi32>
      %71 = arith.andi %67, %70 : vector<16x128xi1>
      %72 = arith.subf %7, %11 : vector<16x128xf32>
      %73 = math.exp %72 : vector<16x128xf32>
      %cst_45 = arith.constant 0.000000e+00 : f32
      %74 = vector.broadcast %cst_45 : f32 to vector<16x128xf32>
      %75 = arith.select %67, %73, %74 : vector<16x128xi1>, vector<16x128xf32>
      %76 = arith.subf %57, %75 : vector<16x128xf32>
      %cst_46 = arith.constant 0.000000e+00 : f32
      %77 = vector.broadcast %cst_46 : f32 to vector<16x128xf32>
      %78 = arith.select %71, %7, %77 : vector<16x128xi1>, vector<16x128xf32>
      %79 = arith.subf %58, %78 : vector<16x128xf32>
      %cst_47 = arith.constant 1.000000e+00 : f32
      %cst_48 = arith.constant 0.000000e+00 : f32
      %80 = vector.broadcast %cst_47 : f32 to vector<16x128xf32>
      %81 = vector.broadcast %cst_48 : f32 to vector<16x128xf32>
      %82 = arith.select %71, %80, %81 : vector<16x128xi1>, vector<16x128xf32>
      %83 = arith.subf %59, %82 : vector<16x128xf32>
      %c0_49 = arith.constant 0 : index
      %c0_50 = arith.constant 0 : index
      %84 = vector.load %arg9[%c0_49, %c0_50] : memref<16x128xf32, #tpu.memory_space<vmem>>, vector<16x128xf32>
      tpu.vector_store %arg9[%c0_49, %c0_50], %76 {strides = array<i32>} : memref<16x128xf32, #tpu.memory_space<vmem>>, vector<16x128xf32>,
      %c0_51 = arith.constant 0 : index
      %c0_52 = arith.constant 0 : index
      %85 = vector.load %arg10[%c0_51, %c0_52] : memref<16x128xf32, #tpu.memory_space<vmem>>, vector<16x128xf32>
      tpu.vector_store %arg10[%c0_51, %c0_52], %79 {strides = array<i32>} : memref<16x128xf32, #tpu.memory_space<vmem>>, vector<16x128xf32>,
      %c0_53 = arith.constant 0 : index
      %c0_54 = arith.constant 0 : index
      %86 = vector.load %arg11[%c0_53, %c0_54] : memref<16x128xf32, #tpu.memory_space<vmem>>, vector<16x128xf32>
      tpu.vector_store %arg11[%c0_53, %c0_54], %83 {strides = array<i32>} : memref<16x128xf32, #tpu.memory_space<vmem>>, vector<16x128xf32>,
    } else {
    }
    %c1_i32_31 = arith.constant 1 : i32
    %45 = arith.addi %arg1, %c1_i32_31 : i32
    %c128_i32_32 = arith.constant 128 : i32
    %46 = arith.muli %45, %c128_i32_32 : i32
    %c20_i32 = arith.constant 20 : i32
    %47 = arith.cmpi sgt, %46, %c20_i32 : i32
    %48 = arith.extui %47 : i1 to i32
    %c0_i32_33 = arith.constant 0 : i32
    %49 = arith.cmpi ne, %48, %c0_i32_33 : i32
    scf.if %49 {
      %c0_36 = arith.constant 0 : index
      %c0_37 = arith.constant 0 : index
      %53 = vector.load %arg9[%c0_36, %c0_37] : memref<16x128xf32, #tpu.memory_space<vmem>>, vector<16x128xf32>
      %54 = tpu.iota {dimensions = array<i32: 1>} : vector<1x128xi32>
      %c128_i32_38 = arith.constant 128 : i32
      %55 = arith.muli %arg1, %c128_i32_38 : i32
      %c0_i32_39 = arith.constant 0 : i32
      %56 = arith.addi %55, %c0_i32_39 : i32
      %57 = vector.broadcast %56 : i32 to vector<1x128xi32>
      %58 = arith.addi %54, %57 : vector<1x128xi32>
      %c20_i32_40 = arith.constant 20 : i32
      %59 = vector.broadcast %c20_i32_40 : i32 to vector<1x128xi32>
      %60 = arith.cmpi sge, %58, %59 : vector<1x128xi32>
      %61 = arith.subf %7, %11 : vector<16x128xf32>
      %62 = math.exp %61 : vector<16x128xf32>
      %cst_41 = arith.constant 0.000000e+00 : f32
      %63 = vector.shape_cast %60 : vector<1x128xi1> to vector<1x128xi1>
      %64 = vector.broadcast %63 : vector<1x128xi1> to vector<16x128xi1>
      %65 = vector.broadcast %cst_41 : f32 to vector<16x128xf32>
      %66 = arith.select %64, %62, %65 : vector<16x128xi1>, vector<16x128xf32>
      %67 = arith.subf %53, %66 : vector<16x128xf32>
      %c0_42 = arith.constant 0 : index
      %c0_43 = arith.constant 0 : index
      %68 = vector.load %arg9[%c0_42, %c0_43] : memref<16x128xf32, #tpu.memory_space<vmem>>, vector<16x128xf32>
      tpu.vector_store %arg9[%c0_42, %c0_43], %67 {strides = array<i32>} : memref<16x128xf32, #tpu.memory_space<vmem>>, vector<16x128xf32>,
    } else {
    }
    %c0_i32_34 = arith.constant 0 : i32
    %50 = arith.cmpi eq, %arg1, %c0_i32_34 : i32
    %51 = arith.extui %50 : i1 to i32
    %c0_i32_35 = arith.constant 0 : i32
    %52 = arith.cmpi ne, %51, %c0_i32_35 : i32
    scf.if %52 {
      %c0_36 = arith.constant 0 : index
      %c0_37 = arith.constant 0 : index
      %53 = vector.load %arg8[%c0_36, %c0_37] : memref<16x128xf32, #tpu.memory_space<vmem>>, vector<16x128xf32>
      %cst_38 = arith.constant dense<0xFF800000> : vector<16xf32>
      %54 = vector.multi_reduction <maximumf>, %53, %cst_38 [1] : vector<16x128xf32> to vector<16xf32>
      %55 = vector.shape_cast %54 : vector<16xf32> to vector<16x1xf32>
      %c0_39 = arith.constant 0 : index
      %c0_40 = arith.constant 0 : index
      %56 = vector.load %arg9[%c0_39, %c0_40] : memref<16x128xf32, #tpu.memory_space<vmem>>, vector<16x128xf32>
      %57 = vector.broadcast %55 : vector<16x1xf32> to vector<16x128xf32>
      %58 = arith.subf %53, %57 : vector<16x128xf32>
      %59 = math.exp %58 : vector<16x128xf32>
      %60 = arith.mulf %56, %59 : vector<16x128xf32>
      %cst_41 = arith.constant dense<0.000000e+00> : vector<16xf32>
      %61 = vector.multi_reduction <add>, %60, %cst_41 [1] : vector<16x128xf32> to vector<16xf32>
      %62 = vector.shape_cast %61 : vector<16xf32> to vector<16x1xf32>
      %c0_42 = arith.constant 0 : index
      %c0_43 = arith.constant 0 : index
      %63 = vector.load %arg10[%c0_42, %c0_43] : memref<16x128xf32, #tpu.memory_space<vmem>>, vector<16x128xf32>
      %cst_44 = arith.constant dense<0.000000e+00> : vector<16xf32>
      %64 = vector.multi_reduction <add>, %63, %cst_44 [1] : vector<16x128xf32> to vector<16xf32>
      %65 = vector.shape_cast %64 : vector<16xf32> to vector<16x1xf32>
      %c0_45 = arith.constant 0 : index
      %c0_46 = arith.constant 0 : index
      %66 = vector.load %arg11[%c0_45, %c0_46] : memref<16x128xf32, #tpu.memory_space<vmem>>, vector<16x128xf32>
      %cst_47 = arith.constant dense<0.000000e+00> : vector<16xf32>
      %67 = vector.multi_reduction <add>, %66, %cst_47 [1] : vector<16x128xf32> to vector<16xf32>
      %68 = vector.shape_cast %67 : vector<16xf32> to vector<16x1xf32>
      %69 = math.log %62 : vector<16x1xf32>
      %70 = arith.addf %55, %69 : vector<16x1xf32>
      %cst_48 = arith.constant 5.000000e-01 : f32
      %71 = vector.broadcast %cst_48 : f32 to vector<16x1xf32>
      %72 = arith.cmpf ogt, %68, %71 : vector<16x1xf32>
      %73 = arith.mulf %68, %70 : vector<16x1xf32>
      %74 = arith.subf %65, %73 : vector<16x1xf32>
      %cst_49 = arith.constant 1.000000e+00 : f32
      %75 = vector.broadcast %cst_49 : f32 to vector<16x1xf32>
      %76 = arith.select %72, %68, %75 : vector<16x1xi1>, vector<16x1xf32>
      %77 = arith.divf %74, %76 : vector<16x1xf32>
      %78 = arith.cmpf oeq, %77, %77 : vector<16x1xf32>
      %79 = arith.andi %72, %78 : vector<16x1xi1>
      %cst_50 = arith.constant -1.000000e+00 : f32
      %80 = vector.broadcast %cst_50 : f32 to vector<16x1xf32>
      %81 = arith.mulf %80, %77 : vector<16x1xf32>
      %cst_51 = arith.constant 0.000000e+00 : f32
      %82 = vector.broadcast %cst_51 : f32 to vector<16x1xf32>
      %83 = arith.select %79, %81, %82 : vector<16x1xi1>, vector<16x1xf32>
      %84 = vector.shape_cast %83 : vector<16x1xf32> to vector<1x16x1xf32>
      %cst_52 = arith.constant dense<0.000000e+00> : vector<1xf32>
      %85 = vector.multi_reduction <add>, %84, %cst_52 [1, 2] : vector<1x16x1xf32> to vector<1xf32>
      %86 = vector.shape_cast %85 : vector<1xf32> to vector<1x1x1xf32>
      %87 = vector.extract %86[0, 0, 0] : f32 from vector<1x1x1xf32>
      %88 = vector.broadcast %87 : f32 to vector<1x8x128xf32>
      %c0_53 = arith.constant 0 : index
      %c0_54 = arith.constant 0 : index
      %c0_55 = arith.constant 0 : index
      %89 = vector.load %arg6[%c0_53, %c0_54, %c0_55] : memref<1x8x128xf32, #tpu.memory_space<vmem>>, vector<1x8x128xf32>
      tpu.vector_store %arg6[%c0_53, %c0_54, %c0_55], %88 {strides = array<i32>} : memref<1x8x128xf32, #tpu.memory_space<vmem>>, vector<1x8x128xf32>,
      %90 = arith.extui %79 : vector<16x1xi1> to vector<16x1xi32>
      %91 = arith.sitofp %90 : vector<16x1xi32> to vector<16x1xf32>
      %92 = vector.shape_cast %91 : vector<16x1xf32> to vector<1x16x1xf32>
      %cst_56 = arith.constant dense<0.000000e+00> : vector<1xf32>
      %93 = vector.multi_reduction <add>, %92, %cst_56 [1, 2] : vector<1x16x1xf32> to vector<1xf32>
      %94 = vector.shape_cast %93 : vector<1xf32> to vector<1x1x1xf32>
      %95 = vector.extract %94[0, 0, 0] : f32 from vector<1x1x1xf32>
      %96 = vector.broadcast %95 : f32 to vector<1x8x128xf32>
      %c0_57 = arith.constant 0 : index
      %c0_58 = arith.constant 0 : index
      %c0_59 = arith.constant 0 : index
      %97 = vector.load %arg7[%c0_57, %c0_58, %c0_59] : memref<1x8x128xf32, #tpu.memory_space<vmem>>, vector<1x8x128xf32>
      tpu.vector_store %arg7[%c0_57, %c0_58, %c0_59], %96 {strides = array<i32>} : memref<1x8x128xf32, #tpu.memory_space<vmem>>, vector<1x8x128xf32>,
    } else {
    }
    return
  }
  func.func @transform_0(%arg0: i32, %arg1: i32) -> (i32, i32) {
    %c0_i32 = arith.constant 0 : i32
    %c0_i32_0 = arith.constant 0 : i32
    return %arg0, %c0_i32 : i32, i32
  }
  func.func @transform_1(%arg0: i32, %arg1: i32) -> (i32, i32) {
    %c0_i32 = arith.constant 0 : i32
    %c0_i32_0 = arith.constant 0 : i32
    return %c0_i32, %arg1 : i32, i32
  }
  func.func @transform_2(%arg0: i32, %arg1: i32) -> (i32, i32) {
    %c0_i32 = arith.constant 0 : i32
    %c0_i32_0 = arith.constant 0 : i32
    return %arg0, %c0_i32 : i32, i32
  }
  func.func @transform_3(%arg0: i32, %arg1: i32) -> (i32, i32) {
    %c0_i32 = arith.constant 0 : i32
    %c0_i32_0 = arith.constant 0 : i32
    return %arg1, %c0_i32 : i32, i32
  }
  func.func @transform_4(%arg0: i32, %arg1: i32) -> (i32, i32, i32) {
    %c0_i32 = arith.constant 0 : i32
    %c0_i32_0 = arith.constant 0 : i32
    %c0_i32_1 = arith.constant 0 : i32
    return %arg0, %c0_i32, %c0_i32_0 : i32, i32, i32
  }
  func.func @transform_5(%arg0: i32, %arg1: i32) -> (i32, i32, i32) {
    %c0_i32 = arith.constant 0 : i32
    %c0_i32_0 = arith.constant 0 : i32
    %c0_i32_1 = arith.constant 0 : i32
    return %arg0, %c0_i32, %c0_i32_0 : i32, i32, i32
  }
}

</mosaic_0001>

<bundles_post_ra>
// kernel: tpu_custom_call.1
= control target key start
LH: loop header
LB: loop body
LE: loop exit
PB: predicated region body
PF: predicated region fallthrough
CT: control target
= control target key end

     0   :  { %11 = vsyncpa [#allocation7], 0  ;;  %s1357_s0 = inlined_call_operand.vmem [shape: s32[32,1], index: 0, kind: input, shape index: {}]   ;;  %s1358_s1 = inlined_call_operand.vmem [shape: s32[1,128], index: 1, kind: input, shape index: {}]   ;;  %s1359_s2 = inlined_call_operand.vmem [shape: bf16[32,128], index: 2, kind: input, shape index: {}]   ;;  %s1360_s3 = inlined_call_operand.hbm [shape: bf16[128,128], index: 3, kind: input, shape index: {}]   ;;  %s1361_s4 = inlined_call_operand.hbm [shape: f32[2,8,128], index: 4, kind: output, shape index: {0}]   ;;  %s1362_s5 = inlined_call_operand.hbm [shape: f32[2,8,128], index: 5, kind: output, shape index: {1}]  }
   0x1   :  { %12 = vsyncpa [#allocation8], 0 }
   0x2   :  { %14 = vsyncpa [#allocation8 + $0x1], 0 }
   0x3   :  { %15 = vsyncpa [#allocation11], 0 }
   0x4   :  { %17 = vsyncpa [#allocation11 + $0x1], 0  ;;  %s1183_s18 = smov 0   ;;  %s1185_s19 = smov 0  }
   0x5   :  { %s1187_s20 = smov 0   ;;  %s1189_s21 = smov 0  }
   0x6   :  { %s1191_s22 = smov 0   ;;  %s1193_s23 = smov 0  }
   0x7 LB: > { %s826_s24 = sadd.s32 4294967295, %s1145_s23   ;;  %s827_s25 = sadd.s32 4294967294, %s1145_s23   ;;  %s1145_s23 = sphi %s1193_s23, %s23_s23   ;;  %s1141_s22 = sphi %s1191_s22, %s1370_s22   ;;  %s1137_s21 = sphi %s1189_s21, %s1369_s21   ;;  %s1133_s20 = sphi %s1187_s20, %s1368_s20   ;;  %s1129_s19 = sphi %s1185_s19, %s1367_s19   ;;  %s1125_s18 = sphi %s1183_s18, %s1366_s18  }
   0x8   : > { %s35_s26 = sadd.s32 1, %s1141_s22  ;;  %s146_s27 = sadd.s32 1, %s1133_s20 }
   0x9   : > { %p37_p0 = scmp.ge.s32.totalorder %s35_s26, 2  ;;  %p156_p1 = scmp.ne.s32.totalorder %s1133_s20, %s1129_s19 }
   0xa   : > { %p157_p2 = scmp.eq.s32.totalorder %s826_s24, 1  ;;  %p162_p3 = scmp.ne.s32.totalorder %s1129_s19, %s1125_s18 }
   0xb   : > { %s1372_s26 = smov (%p37_p0, %s35_s26), 0  ;;  %p163_p5 = scmp.eq.s32.totalorder %s827_s25, 1 }
   0xc   : > { %p1223_p4 = por %p157_p2, %p156_p1  ;;  %s143_s29 = ssub.s32 %s1141_s22, %s1372_s26 }
   0xd   : > { %p828_p6 = scmp.ge.s32.totalorder %s1145_s23, 1  ;;  %p144_p7 = scmp.eq.s32.totalorder %s143_s29, 0 }
   0xe   : > { %p1230_p8 = por %p163_p5, %p162_p3  ;;  %p196_p9 = scmp.lt.s32.totalorder %s1145_s23, 3 }
   0xf   : > { %s1236_s6 = scalar_select %p144_p7, %s1133_s20, %s146_s27  }
  0x10   : > { %p197_p10 = pnand %p828_p6, %p196_p9  ;;  %p921_p11 = scmp.eq.s32.totalorder %s826_s24, 0 }
  0x11   : > { %s216_s9 = sshll.u32 %s1360_s3, 4  ;;  %s1147_s10 = smov [#allocation6]   ;;  %s217_s9 = int_to_ptr.hbm [resolvable:$true] %s216_s9 }
  0x12   : > { %p910_p12 = pneg %p197_p10  ;;  %s218_s11 = sshll.u32 %s1147_s10, 4  ;;  %s219_s11 = int_to_ptr.vmem [resolvable:$true] %s218_s11 }
  0x13   : > { %s1148_s12 = smov 64   ;;  %s1149_s13 = smov 4  }
  0x14   : > { %p911_p13 = pnand %p921_p11, %p910_p12  ;;  %252 = sbr.rel (%p197_p10) target bundleno = 730 (0x2da), region = 36 }
  0x16   : > { %913 = dma.hbm_to_vmem [thread:$0]  (!%p911_p13), %s217_s9, 1024, %s219_s11, [#allocation7], %s1148_s12, %s1148_s12, %s1149_s13  }
  0x19   : > { %1112 = dma.done.wait (%p921_p11), [#allocation7], 1024  }
  0x1a   : > { %1114 = vsyncadd (%p921_p11), [#allocation7], 4294966272  ;;  %s1242_s14 = sand.u32 1, %s1129_s19   ;;  %v895_v0 = vld [vmem:[#allocation6 + $0x38] sm:$0xff]  ;;  %v894_v1 = vld [vmem:[#allocation6 + $0x30] sm:$0xff]  ;;  %s836_s16 = sshll.u32 %s1137_s21, 1 }
  0x1b   : > { %s834_s15 = sshll.u32 %s1242_s14, 3  ;;  %394 = vmatpush.bf16.xpose.msra.mxu0 %v895_v0  ;;  %v893_v2 = vld [vmem:[#allocation6 + $0x28] sm:$0xff]  ;;  %p295_p0 = scmp.lt.s32.totalorder %s836_s16, 3  ;;  %v892_v3 = vld [vmem:[#allocation6 + $0x20] sm:$0xff]  ;;  %v891_v4 = vld [vmem:[#allocation6 + $0x18] sm:$0xff]  ;;  %v1150_v6 = vmov 0  }
  0x1c   : > { %979 = vset.pattern.permute.xlu0 %v1150_v6  ;;  %v890_v7 = vld [vmem:[#allocation6 + $0x10] sm:$0xff]  ;;  %v889_v9 = vld [vmem:[#allocation6 + $0x8] sm:$0xff]  ;;  %v888_v10 = vld [vmem:[#allocation6] sm:$0xff]  ;;  %s1253_s10 = sshll.u32 %s1137_s21, 4  ;;  %v1151_v14 = vmov 0.0   ;;  %s1280_s24 = scalar_lea.vmem [#allocation10], %s834_s15 }
  0x1d   : > { %s1374_s16 = smov (!%p295_p0, %s836_s16), 3  ;;  %s897_s11 = sadd.s32 16, %s1253_s10  ;;  %v1264_v12 = vld [vmem:[%s1358_s1] ss:$0 sm:$0xff] }
  0x1e   : > { %s837_s17 = sshll.u32 %s1374_s16, 3  ;;  %s839_s29 = sshll.u32 %s1374_s16, 2 }
  0x1f   : > { %s298_s27 = scalar_lea.vmem %s1357_s0, %s837_s17  ;;  %s307_s9 = scalar_lea.vmem %s1359_s2, %s839_s29 }
  0x20   : > { %v410_v5 = vld [vmem:[%s298_s27] sm:$0xff]  ;;  %v411_v8 = vld [vmem:[%s298_s27 + $0x8] sm:$0xff]  ;;  %p467_p1 = scmp.lt.s32.totalorder %s1253_s10, 128  ;;  %p878_p2 = scmp.gt.s32.totalorder %s897_s11, 0 }
  0x21   : > { %432 = vperm.xlu0 %979, %v410_v5   ;;  %v887_v11 = vld [vmem:[%s307_s9] sm:$0xff]  ;;  %s1276_s17 = scalar_lea.vmem [#allocation9], %s834_s15 }
  0x22   : > { %p1257_p3 = pnand %p878_p2, %p467_p1 }
  0x23   : > { %395 = vmatpush.bf16.xpose.msra.mxu0 %v894_v1 }
  0x29   : > { %435 = vperm.xlu0 %979, %v411_v8  }
  0x2b   : > { %396 = vmatpush.bf16.xpose.msra.mxu0 %v893_v2 }
  0x33   : > { %397 = vmatpush.bf16.xpose.msra.mxu0 %v892_v3 }
  0x3b   : > { %398 = vmatpush.bf16.xpose.msra.mxu0 %v891_v4 }
  0x43   : > { %399 = vmatpush.bf16.xpose.msra.mxu0 %v890_v7 }
  0x4b   : > { %400 = vmatpush.bf16.xpose.msra.mxu0 %v889_v9 }
  0x53   : > { %401 = vmatpush.bf16.xpose.msra.mxu0 %v888_v10 }
  0x5a   : > { %402 = vmatmul.bf16.vlgmr.msra.gmra.mxu0 %v887_v11 }
  0x93   : > { %v433_v13 = vpop.permute.xlu0 %432 }
  0x94   : > { %vm438_vm0 = vcmp.eq.s32.totalorder %v433_v13, %v1264_v12 }
  0x95   : > { %v440_v15 = vsel %vm438_vm0, 1.0, %v1151_v14 }
  0x96   : > { %462 = vst [vmem:[#allocation5] sm:$0xff] %v440_v15 }
  0x9b   : > { %v436_v16 = vpop.permute.xlu0 %435 }
  0x9c   : > { %vm439_vm1 = vcmp.eq.s32.totalorder %v436_v16, %v1264_v12 }
  0x9d   : > { %v441_v17 = vsel %vm439_vm1, 1.0, %v1151_v14 }
  0x9e   : > { %463 = vst [vmem:[#allocation5 + $0x8] sm:$0xff] %v441_v17 }
  0xd7   : > { %v403_v18 = vpop.f32.mrf.mxu0 }
  0xd8   : > { %v408_v19 = vmul.f32 14.285714, %v403_v18 }
  0xda   : > { %v450_v20 = vmul.f32 %v440_v15, %v408_v19  ;;  %v419_v21 = vsub.f32 -inf, %v408_v19  ;;  %v442_v22 = vsub.f32 %v408_v19, %v408_v19  ;;  %456 = vst [vmem:[#allocation2] sm:$0xff] %v408_v19 }
  0xdc   : > { %v421_v23 = vmul.f32 1.442695, %v419_v21  ;;  %v444_v24 = vmul.f32 1.442695, %v442_v22  ;;  %460 = vst [vmem:[#allocation4 + $0x8] sm:$0xff] %v450_v20 }
  0xde   : > { %981 = vpow2.f32 %v421_v23 }
  0xdf   : > { %v405_v25 = vpop.f32.mrf.mxu0  ;;  %983 = vpow2.f32 %v444_v24 }
  0xe0   : > { %v409_v26 = vmul.f32 14.285714, %v405_v25 }
  0xe2   : > { %v451_v27 = vmul.f32 %v441_v17, %v409_v26  ;;  %v420_v28 = vsub.f32 -inf, %v409_v26  ;;  %v443_v29 = vsub.f32 %v409_v26, %v409_v26  ;;  %457 = vst [vmem:[#allocation2 + $0x8] sm:$0xff] %v409_v26 }
  0xe4   : > { %v982_v30 = vpop.eup %981  ;;  %v423_v31 = vmul.f32 1.442695, %v420_v28  ;;  %v446_v32 = vmul.f32 1.442695, %v443_v29  ;;  %461 = vst [vmem:[#allocation4] sm:$0xff] %v451_v27 }
  0xe5   : > { %v425_v33 = vmul.f32 0.0, %v982_v30  ;;  %v984_v34 = vpop.eup %983 }
  0xe6   : > { %985 = vpow2.f32 %v423_v31 }
  0xe7   : > { %v448_v35 = vadd.f32 %v984_v34, %v425_v33  ;;  %987 = vpow2.f32 %v446_v32 }
  0xe9   : > { %458 = vst [vmem:[#allocation3 + $0x8] sm:$0xff] %v448_v35 }
  0xec   : > { %v986_v36 = vpop.eup %985 }
  0xed   : > { %v426_v37 = vmul.f32 0.0, %v986_v36  ;;  %v988_v38 = vpop.eup %987  ;;  %475 = sbr.rel (%p1257_p3) target bundleno = 258 (0x102), region = 48 }
  0xef   : > { %v449_v39 = vadd.f32 %v988_v38, %v426_v37 }
  0xf1   : > { %459 = vst [vmem:[#allocation3] sm:$0xff] %v449_v39 }
  0xf2   : > { %v476_v40 = vlaneseq  ;;  %v479_v41 = vstv %s1253_s10  ;;  %v482_v46 = vld [vmem:[#allocation3 + $0x8] sm:$0xff]  ;;  %v484_v48 = vld [vmem:[#allocation4 + $0x8] sm:$0xff]  ;;  %v486_v51 = vld [vmem:[#allocation5] sm:$0xff]  ;;  %v1152_v55 = vmov 0.0  }
  0xf3   : > { %v485_v54 = vld [vmem:[#allocation4] sm:$0xff]  ;;  %v487_v57 = vld [vmem:[#allocation5 + $0x8] sm:$0xff] }
  0xf4   : > { %v477_v42 = vshrl.u32 %v476_v40, 7  ;;  %v489_v43 = vand.u32 127, %v476_v40 }
  0xf6   : > { %v480_v44 = vadd.s32 %v479_v41, %v477_v42  ;;  %v478_v45 = vadd.s32 8, %v477_v42 }
  0xf8   : > { %vm492_vm2 = vcmp.eq.s32.totalorder %v480_v44, %v489_v43  ;;  %v481_v47 = vadd.s32 %v479_v41, %v478_v45  ;;  %v483_v50 = vld [vmem:[#allocation3] sm:$0xff] }
  0xf9   : > { %v496_v49 = vsel %vm492_vm2, %v984_v34, 0.0  ;;  %vm494_vm3 = vmand %vm492_vm2, %vm438_vm0 }
  0xfa   : > { %v498_v52 = vsub.f32 %v482_v46, %v496_v49  ;;  %vm493_vm4 = vcmp.eq.s32.totalorder %v481_v47, %v489_v43  ;;  %v500_v53 = vsel %vm494_vm3, %v408_v19, 0.0  ;;  %v504_v56 = vsel %vm494_vm3, 1.0, %v1152_v55 }
  0xfb   : > { %v497_v58 = vsel %vm493_vm4, %v988_v38, 0.0  ;;  %v502_v59 = vsub.f32 %v484_v48, %v500_v53  ;;  %vm495_vm5 = vmand %vm493_vm4, %vm439_vm1  ;;  %v506_v62 = vsub.f32 %v486_v51, %v504_v56 }
  0xfc   : > { %508 = vst [vmem:[#allocation3 + $0x8] sm:$0xff] %v498_v52  ;;  %v499_v60 = vsub.f32 %v483_v50, %v497_v58  ;;  %v501_v61 = vsel %vm495_vm5, %v409_v26, 0.0  ;;  %v505_v63 = vsel %vm495_vm5, 1.0, %v1152_v55 }
  0xfd   : > { %510 = vst [vmem:[#allocation4 + $0x8] sm:$0xff] %v502_v59  ;;  %v503_v0 = vsub.f32 %v485_v54, %v501_v61  ;;  %v507_v1 = vsub.f32 %v487_v57, %v505_v63 }
  0xfe   : > { %509 = vst [vmem:[#allocation3] sm:$0xff] %v499_v60 }
  0xff   : > { %511 = vst [vmem:[#allocation4] sm:$0xff] %v503_v0 }
 0x100   : > { %512 = vst [vmem:[#allocation5] sm:$0xff] %v506_v62 }
 0x101   : > { %513 = vst [vmem:[#allocation5 + $0x8] sm:$0xff] %v507_v1 }
 0x102 PF: > { %v536_v2 = vld [vmem:[#allocation2] sm:$0xff]  ;;  %v537_v4 = vld [vmem:[#allocation2 + $0x8] sm:$0xff]  ;;  %v520_v6 = vlaneseq  ;;  %vm620_vm3 = vcmask 7168   ;;  %s883_s15 = sshll.u32 %s1137_s21, 3  ;;  %s671_s7 = sshll.u32 %s1276_s17, 4  ;;  %s672_s7 = int_to_ptr.vmem [resolvable:$true] %s671_s7 }
 0x103   : > { %538 = vmax.xlane.f32.xlu0 %v536_v2  ;;  %v518_v8 = vld [vmem:[#allocation3 + $0x8] sm:$0xff]  ;;  %s669_s29 = scalar_lea.hbm %s1361_s4, %s883_s15  ;;  %s683_s10 = scalar_lea.hbm %s1362_s5, %s883_s15 }
 0x104   : > { %v521_v7 = vand.u32 127, %v520_v6  ;;  %v556_v15 = vld [vmem:[#allocation4 + $0x8] sm:$0xff]  ;;  %s673_s11 = sshll.u32 %s669_s29, 4  ;;  %s685_s12 = sshll.u32 %s1280_s24, 4  ;;  %s674_s11 = int_to_ptr.hbm [resolvable:$true] %s673_s11  ;;  %s1304_s12 = int_to_ptr.vmem [resolvable:$true] %s685_s12 }
 0x105   : > { %s687_s13 = sshll.u32 %s683_s10, 4  ;;  %s654_s25 = scalar_lea.sflag [#allocation8], %s1242_s14  ;;  %s1306_s13 = int_to_ptr.hbm [resolvable:$true] %s687_s13 }
 0x106   : > { %vm524_vm6 = vcmp.ge.s32.totalorder %v521_v7, 20  ;;  %v557_v16 = vld [vmem:[#allocation4] sm:$0xff]  ;;  %s1045_s27 = sshra.s32 %s674_s11, 4  ;;  %s1051_s9 = scalar_lea.hbm %s1361_s4, 16  ;;  %s1046_s27 = int_to_ptr.hbm [resolvable:$true] %s1045_s27 }
 0x107   : > { %v562_v3 = vld [vmem:[#allocation5] sm:$0xff]  ;;  %v527_v9 = vsel %vm524_vm6, %v984_v34, 0.0  ;;  %v528_v12 = vsel %vm524_vm6, %v988_v38, 0.0  ;;  %s1047_s15 = scalar_lea.hbm %s1046_s27, 8  ;;  %p1052_p9 = scmp.lt.s32.totalorder %s1046_s27, %s1361_s4 }
 0x108   : > { %564 = vadd.xlane.f32.xlu1 %v562_v3  ;;  %v563_v5 = vld [vmem:[#allocation5 + $0x8] sm:$0xff]  ;;  %v529_v10 = vsub.f32 %v518_v8, %v527_v9  ;;  %v519_v11 = vld [vmem:[#allocation3] sm:$0xff]  ;;  %p1048_p5 = scmp.ne.s32.totalorder %s1046_s27, %s1047_s15  ;;  %p1053_p10 = scmp.lt.s32.totalorder %s1051_s9, %s1047_s15 }
 0x109   : > { %v530_v13 = vsub.f32 %v519_v11, %v528_v12 }
 0x10a   : > { %531 = vst [vmem:[#allocation3 + $0x8] sm:$0xff] %v529_v10  ;;  %p1049_p6 = pnand %p1048_p5, %p1223_p4  ;;  %p1054_p11 = por %p1053_p10, %p1052_p9 }
 0x10b   : > { %540 = vmax.xlane.f32.xlu0 %v537_v4  ;;  %532 = vst [vmem:[#allocation3] sm:$0xff] %v530_v13 }
 0x10c   : > { %p1050_p7 = pneg %p1049_p6 }
 0x10e   : > { %p1055_p12 = pnand %p1054_p11, %p1050_p7 }
 0x110   : > { %566 = vadd.xlane.f32.xlu1 %v563_v5 }
 0x113   : > { %558 = vadd.xlane.f32.xlu0 %v556_v15 }
 0x118   : > { %560 = vadd.xlane.f32.xlu1 %v557_v16 }
 0x176   : > { %v539_v17 = vpop.xlane.xlu0 %538 }
 0x177   : > { %v544_v18 = vsub.f32 %v536_v2, %v539_v17 }
 0x179   : > { %v546_v19 = vmul.f32 1.442695, %v544_v18 }
 0x17b   : > { %989 = vpow2.f32 %v546_v19  ;;  %v565_v27 = vpop.xlane.xlu1 %564 }
 0x17c   : > { %vm574_vm7 = vcmp.gt.f32.partialorder %v565_v27, 0.5 }
 0x17d   : > { %v580_v28 = vsel %vm574_vm7, %v565_v27, 1.0 }
 0x17e   : > { %v541_v20 = vpop.xlane.xlu0 %540  ;;  %vm587_vm9 = vweird.f32 %v580_v28  ;;  %v593_v39 = vand.u32 2147483648, %v580_v28  ;;  %v591_v44 = vand.u32 2147483647, %v580_v28 }
 0x17f   : > { %v545_v21 = vsub.f32 %v537_v4, %v541_v20 }
 0x180   : > { %v594_v46 = vor.u32 1.1754944e-38, %v593_v39  ;;  %vm592_vm12 = vcmp.eq.f32.partialorder %v591_v44, 8.507059e+37 }
 0x181   : > { %v990_v22 = vpop.eup %989  ;;  %v548_v23 = vmul.f32 1.442695, %v545_v21 }
 0x182   : > { %v550_v24 = vmul.f32 %v990_v22, %v529_v10 }
 0x183   : > { %991 = vpow2.f32 %v548_v23  ;;  %v567_v29 = vpop.xlane.xlu1 %566 }
 0x184   : > { %552 = vadd.xlane.f32.xlu2 %v550_v24  ;;  %993 = vrcp.f32 %v580_v28  ;;  %vm575_vm8 = vcmp.gt.f32.partialorder %v567_v29, 0.5 }
 0x185   : > { %v581_v30 = vsel %vm575_vm8, %v567_v29, 1.0 }
 0x186   : > { %995 = vrcp.f32 %v581_v30  ;;  %v559_v47 = vpop.xlane.xlu0 %558  ;;  %vm602_vm13 = vweird.f32 %v581_v30  ;;  %v608_v54 = vand.u32 2147483648, %v581_v30  ;;  %v606_v58 = vand.u32 2147483647, %v581_v30 }
 0x188   : > { %v609_v60 = vor.u32 1.1754944e-38, %v608_v54  ;;  %vm607_vm1 = vcmp.eq.f32.partialorder %v606_v58, 8.507059e+37 }
 0x189   : > { %v992_v25 = vpop.eup %991 }
 0x18a   : > { %v551_v26 = vmul.f32 %v992_v25, %v530_v13  ;;  %v994_v31 = vpop.eup %993 }
 0x18b   : > { %v583_v32 = vmul.f32 %v994_v31, %v580_v28  ;;  %vm588_vm10 = vweird.f32 %v994_v31  ;;  %v561_v61 = vpop.xlane.xlu1 %560 }
 0x18c   : > { %554 = vadd.xlane.f32.xlu2 %v551_v26  ;;  %v996_v35 = vpop.eup %995  ;;  %vm589_vm11 = vmor %vm587_vm9, %vm588_vm10 }
 0x18d   : > { %v584_v33 = vsub.f32 1.0, %v583_v32  ;;  %v598_v36 = vmul.f32 %v996_v35, %v581_v30  ;;  %vm603_vm14 = vweird.f32 %v996_v35 }
 0x18e   : > { %vm604_vm15 = vmor %vm602_vm13, %vm603_vm14 }
 0x18f   : > { %v585_v37 = vmul.f32 %v994_v31, %v584_v33  ;;  %v599_v40 = vsub.f32 1.0, %v598_v36 }
 0x191   : > { %v586_v43 = vadd.f32 %v994_v31, %v585_v37  ;;  %v600_v50 = vmul.f32 %v996_v35, %v599_v40 }
 0x193   : > { %v590_v48 = vsel %vm589_vm11, %v994_v31, %v586_v43  ;;  %v601_v57 = vadd.f32 %v996_v35, %v600_v50 }
 0x194   : > { %v595_v53 = vsel %vm592_vm12, %v594_v46, %v590_v48 }
 0x195   : > { %v605_v62 = vsel %vm604_vm15, %v996_v35, %v601_v57 }
 0x196   : > { %v610_v2 = vsel %vm607_vm1, %v609_v60, %v605_v62 }
 0x1f7   : > { %v553_v34 = vpop.xlane.xlu2 %552 }
 0x1f8   : > { %997 = vlog2.f32 %v553_v34 }
 0x1fe   : > { %v998_v38 = vpop.eup %997 }
 0x1ff   : > { %v569_v41 = vmul.f32 0.6931472, %v998_v38  ;;  %v555_v42 = vpop.xlane.xlu2 %554 }
 0x200   : > { %999 = vlog2.f32 %v555_v42 }
 0x201   : > { %v572_v45 = vadd.f32 %v569_v41, %v539_v17 }
 0x203   : > { %v576_v49 = vmul.f32 %v572_v45, %v565_v27 }
 0x205   : > { %v578_v51 = vsub.f32 %v559_v47, %v576_v49 }
 0x206   : > { %v1000_v52 = vpop.eup %999 }
 0x207   : > { %v571_v55 = vmul.f32 0.6931472, %v1000_v52  ;;  %v596_v56 = vmul.f32 %v595_v53, %v578_v51 }
 0x209   : > { %v573_v59 = vadd.f32 %v571_v55, %v541_v20  ;;  %vm612_vm0 = vcmp.eq.f32.partialorder %v596_v56, %v596_v56  ;;  %v616_v0 = vmul.f32 -1.0, %v596_v56 }
 0x20a   : > { %vm614_vm2 = vmand %vm574_vm7, %vm612_vm0 }
 0x20b   : > { %v577_v63 = vmul.f32 %v573_v59, %v567_v29  ;;  %v879_v5 = vsel %vm614_vm2, 1.0, %v1151_v14  ;;  %v618_v6 = vsel %vm614_vm2, %v616_v0, 0.0 }
 0x20c   : > { %v639_v9 = vsel %vm620_vm3, %v879_v5, 0.0  ;;  %v621_v11 = vsel %vm620_vm3, %v618_v6, 0.0 }
 0x20d   : > { %v579_v1 = vsub.f32 %v561_v61, %v577_v63 }
 0x20f   : > { %v611_v3 = vmul.f32 %v610_v2, %v579_v1 }
 0x211   : > { %vm613_vm4 = vcmp.eq.f32.partialorder %v611_v3, %v611_v3  ;;  %v617_v4 = vmul.f32 -1.0, %v611_v3 }
 0x212   : > { %vm615_vm5 = vmand %vm575_vm8, %vm613_vm4 }
 0x213   : > { %v880_v7 = vsel %vm615_vm5, 1.0, %v1151_v14  ;;  %v619_v8 = vsel %vm615_vm5, %v617_v4, 0.0 }
 0x214   : > { %v640_v10 = vsel %vm620_vm3, %v880_v7, 0.0  ;;  %v622_v12 = vsel %vm620_vm3, %v619_v8, 0.0 }
 0x215   : > { %v641_v13 = vadd.f32 %v640_v10, %v639_v9  ;;  %v623_v15 = vadd.f32 %v622_v12, %v621_v11 }
 0x217   : > { %642 = vadd.xlane.f32.xlu0 %v641_v13  ;;  %624 = vadd.xlane.f32.xlu2 %v623_v15 }
 0x28a   : > { %v643_v16 = vpop.xlane.xlu0 %642  ;;  %v625_v17 = vpop.xlane.xlu2 %624 }
 0x28b   : > { %v644_v18 = vrot.slane %v643_v16, 4  ;;  %v626_v19 = vrot.slane %v625_v17, 4 }
 0x28d   : > { %v645_v20 = vadd.f32 %v644_v18, %v643_v16  ;;  %v627_v21 = vadd.f32 %v626_v19, %v625_v17 }
 0x28f   : > { %v646_v22 = vrot.slane %v645_v20, 2  ;;  %v628_v14 = vrot.slane %v627_v21, 2 }
 0x291   : > { %v647_v23 = vadd.f32 %v646_v22, %v645_v20  ;;  %v629_v24 = vadd.f32 %v628_v14, %v627_v21 }
 0x293   : > { %v630_v25 = vrot.slane %v629_v24, 1  ;;  %v648_v26 = vrot.slane %v647_v23, 1 }
 0x295   : > { %v631_v27 = vadd.f32 %v630_v25, %v629_v24  ;;  %v649_v28 = vadd.f32 %v648_v26, %v647_v23 }
 0x297   : > { %898 = vpush %v631_v27 }
 0x298   : > { %900 = vpush %v649_v28 }
 0x2c8   : > { %s899_s16 = spop %898 }
 0x2c9   : > { %v633_v29 = vstv %s899_s16  ;;  %s901_s21 = spop %900 }
 0x2ca   : > { %634 = vst [vmem:[%s1276_s17] sm:$0xff] %v633_v29  ;;  %v651_v30 = vstv %s901_s21 }
 0x2cb   : > { %652 = vst [vmem:[%s1280_s24] sm:$0xff] %v651_v30 }
 0x2cc   : > { %1058 = shalt.err (!%p1055_p12)
}
 0x2cd   : > { %906 = dma.vmem_to_hbm [thread:$0]  (%p1223_p4), %s672_s7, 128, %s674_s11, %s654_s25  }
 0x2ce   : > { %s659_s17 = scalar_lea.sflag [#allocation11], %s1242_s14  ;;  %s1073_s24 = sshra.s32 %s1306_s13, 4  ;;  %s1074_s24 = int_to_ptr.hbm [resolvable:$true] %s1073_s24 }
 0x2cf   : > { %s1075_s21 = scalar_lea.hbm %s1074_s24, 8  ;;  %s1079_s15 = scalar_lea.hbm %s1362_s5, 16 }
 0x2d0   : > { %p1076_p13 = scmp.ne.s32.totalorder %s1074_s24, %s1075_s21  ;;  %p1080_p2 = scmp.lt.s32.totalorder %s1074_s24, %s1362_s5 }
 0x2d1   : > { %p1081_p3 = scmp.lt.s32.totalorder %s1079_s15, %s1075_s21 }
 0x2d2   : > { %p1077_p0 = pnand %p1076_p13, %p1223_p4 }
 0x2d3   : > { %p1082_p5 = por %p1081_p3, %p1080_p2 }
 0x2d4   : > { %p1078_p1 = pneg %p1077_p0 }
 0x2d6   : > { %p1083_p6 = pnand %p1082_p5, %p1078_p1 }
 0x2d8   : > { %1086 = shalt.err (!%p1083_p6)
}
 0x2d9   : > { %907 = dma.vmem_to_hbm [thread:$0]  (%p1223_p4), %s1304_s12, 128, %s1306_s13, %s659_s17  }
 0x2da PF: > { %p923_p7 = scmp.ge.s32.totalorder %s1145_s23, 2  ;;  %s699_s14 = sand.u32 1, %s1125_s18  }
 0x2db   : > { %s700_s7 = scalar_lea.sflag [#allocation8], %s699_s14 }
 0x2dc   : > { %p915_p9 = pnand %p923_p7, %p1230_p8 }
 0x2de   : > { %p916_p10 = pneg %p915_p9 }
 0x2e0   : > { %1116 = dma.done.wait (%p916_p10), %s700_s7, 128  }
 0x2e1   : > { %1118 = vsyncadd (%p916_p10), %s700_s7, 4294967168  ;;  %s710_s11 = scalar_lea.sflag [#allocation11], %s699_s14 }
 0x2e2   : > { %1120 = dma.done.wait (%p916_p10), %s710_s11, 128  }
 0x2e3   : > { %1122 = vsyncadd (%p916_p10), %s710_s11, 4294967168  ;;  %s23_s23 = sadd.s32 1, %s1145_s23   ;;  %s1366_s18 = smov %s1129_s19 }
 0x2e4   : > { %p20_p11 = scmp.ge.s32.totalorder %s23_s23, 4   ;;  %s1367_s19 = smov %s1133_s20 }
 0x2e5   : > { %s1368_s20 = smov %s1236_s6  ;;  %s1369_s21 = smov %s1141_s22 }
 0x2e6   : > { %s1370_s22 = smov %s1372_s26  ;;  %22 = sbr.rel (!%p20_p11) target bundleno = 7 (0x7), region = 116 }
 0x2eb   :  { %716 = vsyncpa [#allocation7], 1 }
 0x2ec   :  { %718 = vsyncpa [#allocation7 + $0x1], 1 }
 0x2ed   :  { %719 = vsyncpa [#allocation8], 1 }
 0x2ee   :  { %721 = vsyncpa [#allocation8 + $0x1], 1 }
 0x2ef   :  { %722 = vsyncpa [#allocation11], 1 }
 0x2f0   :  { %724 = vsyncpa [#allocation11 + $0x1], 1 }

</bundles_post_ra>
